<compile_context>
chip_gen: v6e
topology: v6e:2x2x1
jax: 0.10.0
libtpu: 0.0.40
codegen_flags: <defaults>
</compile_context>

<pallas_src>
import functools

import jax
import jax.numpy as jnp
from jax.experimental import pallas as pl
from jax.experimental.pallas import tpu as pltpu


def _mlp_head_kernel(x_ref, w1_ref, b1_ref, w2_ref, b2_ref, w3_ref, b3_ref,
                     o_ref, acc_ref):
    """Fused (Linear+ReLU) -> (Linear+ReLU) -> Linear, tiled over the hidden
    (layer-2 reduction) dimension."""
    k = pl.program_id(0)

    @pl.when(k == 0)
    def _init():
        acc_ref[...] = jnp.zeros_like(acc_ref)

    # Layer 1, output-column chunk: relu(x @ w1[:, chunk] + b1[chunk]).
    h1 = jnp.dot(x_ref[...], w1_ref[...], preferred_element_type=jnp.float32)
    h1 = jnp.maximum(h1 + b1_ref[...], 0.0)

    # Layer 2 partial-K accumulation: acc += h1_chunk @ w2[chunk, :].
    acc_ref[...] += jnp.dot(h1.astype(w2_ref.dtype), w2_ref[...],
                            preferred_element_type=jnp.float32)

    # Epilogue on the last reduction step: b2 + ReLU + layer-3 matmul (+ b3).
    # Output is only written here; Pallas writes back the final block state.
    @pl.when(k == pl.num_programs(0) - 1)
    def _finalize():
        h2 = jnp.maximum(acc_ref[...] + b2_ref[...], 0.0)
        o_ref[...] = (jnp.dot(h2.astype(w3_ref.dtype), w3_ref[...],
                              preferred_element_type=jnp.float32)
                      + b3_ref[...])


def prepare_head_params(params, num_classes):
    """One-time param prep (hoisted out of the per-call path): cast weights to
    bf16 for streaming, reshape biases to (1, N) f32, zero-pad w3/b3 out to a
    128-lane multiple so the last matmul/store are lane-dense."""
    H = params["w1"].shape[1]
    nc_pad = max(128, pl.cdiv(num_classes, 128) * 128)
    w3p = jnp.zeros((H, nc_pad), jnp.float32).at[:, :num_classes].set(
        params["w3"].astype(jnp.float32))
    b3p = jnp.zeros((1, nc_pad), jnp.float32).at[0, :num_classes].set(
        params["b3"].astype(jnp.float32))
    return {
        "w1": params["w1"].astype(jnp.bfloat16),
        "b1": params["b1"].reshape(1, -1).astype(jnp.float32),
        "w2": params["w2"].astype(jnp.bfloat16),
        "b2": params["b2"].reshape(1, -1).astype(jnp.float32),
        "w3": w3p.astype(jnp.bfloat16),
        "b3": b3p,
    }


def _estimate_vmem_bytes(Bp, D, H, nc_pad, tk):
    """Conservative scoped-VMEM estimate for a given tk (assumes the default
    double-buffering for every pipelined input/output block)."""
    bf16, f32 = 2, 4
    dbl = 2
    streamed = dbl * (D * tk * bf16        # w1 column chunk
                      + 1 * tk * f32       # b1 chunk
                      + tk * H * bf16)     # w2 row chunk
    resident = dbl * (Bp * D * bf16        # x
                      + 1 * H * f32        # b2
                      + H * nc_pad * bf16  # w3
                      + 1 * nc_pad * f32)  # b3
    out = dbl * (Bp * nc_pad * f32)
    acc = Bp * H * f32                     # layer-2 accumulator scratch
    return streamed + resident + out + acc


def _choose_tk(tk, D, H, Bp, nc_pad, vmem_budget_bytes):
    """Cap tk so the working set fits the scoped-VMEM budget (guards v7x's
    smaller 64 MiB physical VMEM; v5e/v6e could go larger)."""
    tk = min(tk, H)
    assert H % tk == 0 and tk % 128 == 0, (H, tk)
    while tk > 128 and _estimate_vmem_bytes(Bp, D, H, nc_pad, tk) > vmem_budget_bytes:
        tk //= 2
    assert H % tk == 0 and tk % 128 == 0, (H, tk)
    return tk


def masknet_classifier_head(features, prepared, num_classes, *, tk=1024,
                            vmem_budget_bytes=40 * 1024 * 1024):
    """Runs the MaskNet classifier_last_linear head as one fused Pallas kernel.

    features: [B, in_dim] float (pooled xception features).  Batch as many
              rows per call as possible — the ~50 MiB weight stream dominates,
              so per-sample cost drops almost linearly with B.
    prepared: output of prepare_head_params
    returns:  [B, num_classes] float32 logits
    """
    B, D = features.shape
    H = prepared["w1"].shape[1]
    nc_pad = prepared["w3"].shape[1]

    # Pad batch up to a multiple of 16 so bf16 tiles are fully sublane-packed.
    Bp = pl.cdiv(B, 16) * 16
    x = features.astype(jnp.bfloat16)
    if Bp != B:
        x = jnp.zeros((Bp, D), jnp.bfloat16).at[:B].set(x)
        # Padded rows compute relu(b1)-derived garbage that is sliced off below.

    tk = _choose_tk(tk, D, H, Bp, nc_pad, vmem_budget_bytes)
    num_k = H // tk

    out_pad = pl.pallas_call(
        _mlp_head_kernel,
        out_shape=jax.ShapeDtypeStruct((Bp, nc_pad), jnp.float32),
        grid=(num_k,),
        in_specs=[
            pl.BlockSpec((Bp, D), lambda k: (0, 0)),       # x   (resident)
            pl.BlockSpec((D, tk), lambda k: (0, k)),       # w1  column chunk
            pl.BlockSpec((1, tk), lambda k: (0, k)),       # b1  chunk
            pl.BlockSpec((tk, H), lambda k: (k, 0)),       # w2  row chunk
            pl.BlockSpec((1, H), lambda k: (0, 0)),        # b2  (resident)
            pl.BlockSpec((H, nc_pad), lambda k: (0, 0)),   # w3  (resident)
            pl.BlockSpec((1, nc_pad), lambda k: (0, 0)),   # b3  (resident)
        ],
        out_specs=pl.BlockSpec((Bp, nc_pad), lambda k: (0, 0)),
        scratch_shapes=[pltpu.VMEM((Bp, H), jnp.float32)],  # layer-2 accumulator
        compiler_params=pltpu.CompilerParams(
            dimension_semantics=("arbitrary",),             # reduction axis
            vmem_limit_bytes=48 * 1024 * 1024),
    )(x, prepared["w1"], prepared["b1"], prepared["w2"], prepared["b2"],
      prepared["w3"], prepared["b3"])

    return out_pad[:B, :num_classes]


def init_params(key, in_dim, hidden, num_classes):
    """Deterministic synthetic init matching nn.Linear parameter shapes."""
    ks = jax.random.split(key, 6)
    scale = lambda fan_in: 1.0 / jnp.sqrt(jnp.float32(fan_in))
    return {
        "w1": jax.random.uniform(ks[0], (in_dim, hidden), jnp.float32,
                                 -scale(in_dim), scale(in_dim)),
        "b1": jax.random.uniform(ks[1], (hidden,), jnp.float32,
                                 -scale(in_dim), scale(in_dim)),
        "w2": jax.random.uniform(ks[2], (hidden, hidden), jnp.float32,
                                 -scale(hidden), scale(hidden)),
        "b2": jax.random.uniform(ks[3], (hidden,), jnp.float32,
                                 -scale(hidden), scale(hidden)),
        "w3": jax.random.uniform(ks[4], (hidden, num_classes), jnp.float32,
                                 -scale(hidden), scale(hidden)),
        "b3": jax.random.uniform(ks[5], (num_classes,), jnp.float32,
                                 -scale(hidden), scale(hidden)),
    }


def reference_head(features, prepared, num_classes):
    """Pure-JAX reference mirroring the kernel numerics (bf16 operands,
    f32 accumulation)."""
    x = features.astype(jnp.bfloat16)
    h1 = jnp.dot(x, prepared["w1"],
                 preferred_element_type=jnp.float32) + prepared["b1"]
    h1 = jnp.maximum(h1, 0.0)
    h2 = jnp.dot(h1.astype(jnp.bfloat16), prepared["w2"],
                 preferred_element_type=jnp.float32) + prepared["b2"]
    h2 = jnp.maximum(h2, 0.0)
    out = jnp.dot(h2.astype(jnp.bfloat16), prepared["w3"],
                  preferred_element_type=jnp.float32) + prepared["b3"]
    return out[:, :num_classes]


if __name__ == "__main__":
    # Small test shapes.  Real MaskNet head: in_dim = 2048 (xception pooled
    # features), hidden = 4096, num_classes = 10, tk = 1024 (default).
    # TK=256 here forces a 2-step reduction grid so the accumulate + epilogue
    # path is exercised.
    B, IN_DIM, HIDDEN, NUM_CLASSES, TK = 8, 256, 512, 10, 256

    key = jax.random.PRNGKey(0)
    k_x, k_p = jax.random.split(key)
    features = jax.random.normal(k_x, (B, IN_DIM), jnp.float32)
    params = init_params(k_p, IN_DIM, HIDDEN, NUM_CLASSES)
    prepared = prepare_head_params(params, NUM_CLASSES)

    run = jax.jit(functools.partial(masknet_classifier_head,
                                    num_classes=NUM_CLASSES, tk=TK))
    logits = run(features, prepared)
    jax.block_until_ready(logits)

    ref = reference_head(features, prepared, NUM_CLASSES)
    assert logits.shape == (B, NUM_CLASSES)
    max_err = float(jnp.max(jnp.abs(logits - ref)))
    assert jnp.allclose(logits, ref, atol=2e-2, rtol=2e-2), max_err

    print("KERNEL_OK")
</pallas_src>

<mosaic_0001>
module attributes {stable_mosaic.version = 11 : i64} {
  func.func @_mlp_head_kernel(%arg0: i32, %arg1: memref<16x256xbf16, #tpu.memory_space<vmem>>, %arg2: memref<256x256xbf16, #tpu.memory_space<vmem>>, %arg3: memref<1x256xf32, #tpu.memory_space<vmem>>, %arg4: memref<256x512xbf16, #tpu.memory_space<vmem>>, %arg5: memref<1x512xf32, #tpu.memory_space<vmem>>, %arg6: memref<512x128xbf16, #tpu.memory_space<vmem>>, %arg7: memref<1x128xf32, #tpu.memory_space<vmem>>, %arg8: memref<16x128xf32, #tpu.memory_space<vmem>>, %arg9: memref<16x512xf32, #tpu.memory_space<vmem>>) attributes {dimension_semantics = [#tpu.dimension_semantics<arbitrary>], iteration_bounds = array<i64: 2>, scalar_prefetch = 0 : i64, scratch_operands = 1 : i64, tpu.core_type = #tpu.core_type<tc>, window_params = [{pipeline_mode = #tpu.pipeline_mode<synchronous>, transform_indices = @transform_0, window_bounds = array<i64: 16, 256>}, {transform_indices = @transform_1, window_bounds = array<i64: 256, 256>}, {transform_indices = @transform_2, window_bounds = array<i64: 1, 256>}, {transform_indices = @transform_3, window_bounds = array<i64: 256, 512>}, {pipeline_mode = #tpu.pipeline_mode<synchronous>, transform_indices = @transform_4, window_bounds = array<i64: 1, 512>}, {pipeline_mode = #tpu.pipeline_mode<synchronous>, transform_indices = @transform_5, window_bounds = array<i64: 512, 128>}, {pipeline_mode = #tpu.pipeline_mode<synchronous>, transform_indices = @transform_6, window_bounds = array<i64: 1, 128>}, {pipeline_mode = #tpu.pipeline_mode<synchronous>, transform_indices = @transform_7, window_bounds = array<i64: 16, 128>}]} {
    %c0_i32 = arith.constant 0 : i32
    %0 = arith.cmpi eq, %arg0, %c0_i32 : i32
    %1 = arith.extui %0 : i1 to i32
    %c0_i32_0 = arith.constant 0 : i32
    %2 = arith.cmpi ne, %1, %c0_i32_0 : i32
    scf.if %2 {
      %cst_15 = arith.constant 0.000000e+00 : f32
      %20 = vector.broadcast %cst_15 : f32 to vector<16x512xf32>
      %c0_16 = arith.constant 0 : index
      %c0_17 = arith.constant 0 : index
      %21 = vector.load %arg9[%c0_16, %c0_17] : memref<16x512xf32, #tpu.memory_space<vmem>>, vector<16x512xf32>
      tpu.vector_store %arg9[%c0_16, %c0_17], %20 {strides = array<i32>} : memref<16x512xf32, #tpu.memory_space<vmem>>, vector<16x512xf32>,
    } else {
    }
    %c0 = arith.constant 0 : index
    %c0_1 = arith.constant 0 : index
    %3 = vector.load %arg1[%c0, %c0_1] : memref<16x256xbf16, #tpu.memory_space<vmem>>, vector<16x256xbf16>
    %c0_2 = arith.constant 0 : index
    %c0_3 = arith.constant 0 : index
    %4 = vector.load %arg2[%c0_2, %c0_3] : memref<256x256xbf16, #tpu.memory_space<vmem>>, vector<256x256xbf16>
    %cst = arith.constant dense<0.000000e+00> : vector<16x256xf32>
    %5 = tpu.matmul %3, %4, %cst {dimension_numbers = #tpu.dot_dimension_numbers<[1], [0], [0], [1], [0, 0, 1, 1], [], []>} : vector<16x256xbf16>, vector<256x256xbf16>, vector<16x256xf32> -> vector<16x256xf32>
    %c0_4 = arith.constant 0 : index
    %c0_5 = arith.constant 0 : index
    %6 = vector.load %arg3[%c0_4, %c0_5] : memref<1x256xf32, #tpu.memory_space<vmem>>, vector<1x256xf32>
    %7 = vector.broadcast %6 : vector<1x256xf32> to vector<16x256xf32>
    %8 = arith.addf %5, %7 : vector<16x256xf32>
    %cst_6 = arith.constant 0.000000e+00 : f32
    %9 = vector.broadcast %cst_6 : f32 to vector<16x256xf32>
    %10 = arith.maximumf %8, %9 : vector<16x256xf32>
    %c0_7 = arith.constant 0 : index
    %c0_8 = arith.constant 0 : index
    %11 = vector.load %arg9[%c0_7, %c0_8] : memref<16x512xf32, #tpu.memory_space<vmem>>, vector<16x512xf32>
    %12 = arith.truncf %10 : vector<16x256xf32> to vector<16x256xbf16>
    %c0_9 = arith.constant 0 : index
    %c0_10 = arith.constant 0 : index
    %13 = vector.load %arg4[%c0_9, %c0_10] : memref<256x512xbf16, #tpu.memory_space<vmem>>, vector<256x512xbf16>
    %cst_11 = arith.constant dense<0.000000e+00> : vector<16x512xf32>
    %14 = tpu.matmul %12, %13, %cst_11 {dimension_numbers = #tpu.dot_dimension_numbers<[1], [0], [0], [1], [0, 0, 1, 1], [], []>} : vector<16x256xbf16>, vector<256x512xbf16>, vector<16x512xf32> -> vector<16x512xf32>
    %15 = arith.addf %11, %14 : vector<16x512xf32>
    %c0_12 = arith.constant 0 : index
    %c0_13 = arith.constant 0 : index
    %16 = vector.load %arg9[%c0_12, %c0_13] : memref<16x512xf32, #tpu.memory_space<vmem>>, vector<16x512xf32>
    tpu.vector_store %arg9[%c0_12, %c0_13], %15 {strides = array<i32>} : memref<16x512xf32, #tpu.memory_space<vmem>>, vector<16x512xf32>,
    %c1_i32 = arith.constant 1 : i32
    %17 = arith.cmpi eq, %arg0, %c1_i32 : i32
    %18 = arith.extui %17 : i1 to i32
    %c0_i32_14 = arith.constant 0 : i32
    %19 = arith.cmpi ne, %18, %c0_i32_14 : i32
    scf.if %19 {
      %c0_15 = arith.constant 0 : index
      %c0_16 = arith.constant 0 : index
      %20 = vector.load %arg9[%c0_15, %c0_16] : memref<16x512xf32, #tpu.memory_space<vmem>>, vector<16x512xf32>
      %c0_17 = arith.constant 0 : index
      %c0_18 = arith.constant 0 : index
      %21 = vector.load %arg5[%c0_17, %c0_18] : memref<1x512xf32, #tpu.memory_space<vmem>>, vector<1x512xf32>
      %22 = vector.broadcast %21 : vector<1x512xf32> to vector<16x512xf32>
      %23 = arith.addf %20, %22 : vector<16x512xf32>
      %cst_19 = arith.constant 0.000000e+00 : f32
      %24 = vector.broadcast %cst_19 : f32 to vector<16x512xf32>
      %25 = arith.maximumf %23, %24 : vector<16x512xf32>
      %26 = arith.truncf %25 : vector<16x512xf32> to vector<16x512xbf16>
      %c0_20 = arith.constant 0 : index
      %c0_21 = arith.constant 0 : index
      %27 = vector.load %arg6[%c0_20, %c0_21] : memref<512x128xbf16, #tpu.memory_space<vmem>>, vector<512x128xbf16>
      %cst_22 = arith.constant dense<0.000000e+00> : vector<16x128xf32>
      %28 = tpu.matmul %26, %27, %cst_22 {dimension_numbers = #tpu.dot_dimension_numbers<[1], [0], [0], [1], [0, 0, 1, 1], [], []>} : vector<16x512xbf16>, vector<512x128xbf16>, vector<16x128xf32> -> vector<16x128xf32>
      %c0_23 = arith.constant 0 : index
      %c0_24 = arith.constant 0 : index
      %29 = vector.load %arg7[%c0_23, %c0_24] : memref<1x128xf32, #tpu.memory_space<vmem>>, vector<1x128xf32>
      %30 = vector.broadcast %29 : vector<1x128xf32> to vector<16x128xf32>
      %31 = arith.addf %28, %30 : vector<16x128xf32>
      %c0_25 = arith.constant 0 : index
      %c0_26 = arith.constant 0 : index
      %32 = vector.load %arg8[%c0_25, %c0_26] : memref<16x128xf32, #tpu.memory_space<vmem>>, vector<16x128xf32>
      tpu.vector_store %arg8[%c0_25, %c0_26], %31 {strides = array<i32>} : memref<16x128xf32, #tpu.memory_space<vmem>>, vector<16x128xf32>,
    } else {
    }
    return
  }
  func.func @transform_0(%arg0: i32) -> (i32, i32) {
    %c0_i32 = arith.constant 0 : i32
    %c0_i32_0 = arith.constant 0 : i32
    %c0_i32_1 = arith.constant 0 : i32
    return %c0_i32, %c0_i32_0 : i32, i32
  }
  func.func @transform_1(%arg0: i32) -> (i32, i32) {
    %c0_i32 = arith.constant 0 : i32
    %c0_i32_0 = arith.constant 0 : i32
    return %c0_i32, %arg0 : i32, i32
  }
  func.func @transform_2(%arg0: i32) -> (i32, i32) {
    %c0_i32 = arith.constant 0 : i32
    %c0_i32_0 = arith.constant 0 : i32
    return %c0_i32, %arg0 : i32, i32
  }
  func.func @transform_3(%arg0: i32) -> (i32, i32) {
    %c0_i32 = arith.constant 0 : i32
    %c0_i32_0 = arith.constant 0 : i32
    return %arg0, %c0_i32 : i32, i32
  }
  func.func @transform_4(%arg0: i32) -> (i32, i32) {
    %c0_i32 = arith.constant 0 : i32
    %c0_i32_0 = arith.constant 0 : i32
    %c0_i32_1 = arith.constant 0 : i32
    return %c0_i32, %c0_i32_0 : i32, i32
  }
  func.func @transform_5(%arg0: i32) -> (i32, i32) {
    %c0_i32 = arith.constant 0 : i32
    %c0_i32_0 = arith.constant 0 : i32
    %c0_i32_1 = arith.constant 0 : i32
    return %c0_i32, %c0_i32_0 : i32, i32
  }
  func.func @transform_6(%arg0: i32) -> (i32, i32) {
    %c0_i32 = arith.constant 0 : i32
    %c0_i32_0 = arith.constant 0 : i32
    %c0_i32_1 = arith.constant 0 : i32
    return %c0_i32, %c0_i32_0 : i32, i32
  }
  func.func @transform_7(%arg0: i32) -> (i32, i32) {
    %c0_i32 = arith.constant 0 : i32
    %c0_i32_0 = arith.constant 0 : i32
    %c0_i32_1 = arith.constant 0 : i32
    return %c0_i32, %c0_i32_0 : i32, i32
  }
}

</mosaic_0001>

<bundles_post_ra>
// kernel: masknet_classifier_head.1
= control target key start
LH: loop header
LB: loop body
LE: loop exit
PB: predicated region body
PF: predicated region fallthrough
CT: control target
= control target key end

     0   :  { %s2555_s0 = inlined_call_operand.vmem [shape: bf16[16,256], index: 0, kind: input, shape index: {}]   ;;  %s2556_s1 = inlined_call_operand.hbm [shape: bf16[256,512], index: 1, kind: input, shape index: {}]   ;;  %s2557_s2 = inlined_call_operand.vmem [shape: f32[1,512], index: 2, kind: input, shape index: {}]   ;;  %s2558_s3 = inlined_call_operand.hbm [shape: bf16[512,512], index: 3, kind: input, shape index: {}]   ;;  %s2559_s4 = inlined_call_operand.vmem [shape: f32[1,512], index: 4, kind: input, shape index: {}]   ;;  %s2560_s5 = inlined_call_operand.hbm [shape: bf16[512,128], index: 5, kind: input, shape index: {}]   ;;  %s2561_s6 = inlined_call_operand.vmem [shape: f32[1,128], index: 6, kind: input, shape index: {}]   ;;  %s2562_s7 = inlined_call_operand.vmem [shape: f32[16,128], index: 7, kind: output, shape index: {}]  }
   0x1   :  { %2566 = sst [smem:[#allocation13_spill]] %s2556_s1 }
   0x2   :  { %12 = vsyncpa [#allocation4], 0 }
   0x3   :  { %14 = vsyncpa [#allocation4 + $0x1], 0 }
   0x4   :  { %15 = vsyncpa [#allocation6], 0 }
   0x5   :  { %17 = vsyncpa [#allocation6 + $0x1], 0  ;;  %s2228_s24 = smov 0   ;;  %s2230_s25 = smov 0  }
   0x6   :  { %s2232_s26 = smov 0   ;;  %s2234_s27 = smov 0  }
   0x7 LB: > { %2567 = sst [smem:[#allocation11_spill]] %s2172_s26  ;;  %s2247_s28 = sadd.s32 4294967295, %s2176_s27   ;;  %s2176_s27 = sphi %s2234_s27, %s2583_s27   ;;  %s2172_s26 = sphi %s2232_s26, %s2580_s26   ;;  %s2168_s25 = sphi %s2230_s25, %s2582_s25   ;;  %s2164_s24 = sphi %s2228_s24, %s2581_s24  }
   0x8   : > { %s2250_s29 = sadd.s32 1, %s2176_s27   ;;  %s51_s8 = sadd.s32 1, %s2172_s26 }
   0x9   : > { %s48_s30 = ssub.s32 %s2176_s27, %s2250_s29  ;;  %p58_p1 = scmp.ne.s32.totalorder %s2172_s26, %s2168_s25 }
   0xa   : > { %p49_p0 = scmp.eq.s32.totalorder %s48_s30, 0  ;;  %p59_p2 = scmp.eq.s32.totalorder %s2176_s27, 0 }
   0xb   : > { %p64_p3 = scmp.ne.s32.totalorder %s2168_s25, %s2164_s24  ;;  %p2563_p5 = scmp.eq.s32.totalorder %s2247_s28, 0 }
   0xc   : > { %s2260_s9 = scalar_select %p49_p0, %s2172_s26, %s51_s8  }
   0xd   : > { %p2262_p4 = por %p59_p2, %p58_p1  ;;  %p1614_p6 = scmp.ge.s32.totalorder %s2176_s27, 1 }
   0xe   : > { %2568 = sst [smem:[#allocation12_spill]] %s2260_s9  ;;  %p211_p7 = scmp.lt.s32.totalorder %s2176_s27, 3 }
   0xf   : > { %p2271_p8 = por %p2563_p5, %p64_p3  ;;  %s2178_s13 = smov [#allocation7]  }
  0x10   : > { %p2276_p10 = pnand %p1614_p6, %p211_p7  ;;  %s229_s14 = sshll.u32 %s2178_s13, 4  ;;  %s230_s14 = int_to_ptr.vmem [resolvable:$true] %s229_s14 }
  0x11   : > { %s2570_s11 = scalar_select %p2271_p8, 1, 0 }
  0x12   : > { %p1819_p11 = pneg %p2276_p10  ;;  %p1831_p13 = scmp.lt.s32.totalorder %s2176_s27, 2 }
  0x13   : > { %s2290_s16 = sand.u32 1, %s2172_s26   ;;  %s1764_s17 = sshll.u32 %s2176_s27, 7 }
  0x14   : > { %p2284_p12 = pnand %p1819_p11, %p2563_p5  ;;  %p2295_p0 = pnand %p1831_p13, %p2262_p4 }
  0x15   : > { %s2063_s19 = scalar_lea.vmem %s230_s14, 4096  ;;  %p2071_p7 = scmp.lt.s32.totalorder %s230_s14, %s230_s14 }
  0x16   : > { %p2054_p1 = pneg %p2284_p12  ;;  %p2064_p2 = scmp.ne.s32.totalorder %s230_s14, %s2063_s19 }
  0x17   : > { %p2072_p11 = scmp.lt.s32.totalorder %s2063_s19, %s2063_s19 }
  0x18   : > { %p2066_p3 = pnand %p2064_p2, %p2054_p1 }
  0x19   : > { %p2073_p9 = por %p2072_p11, %p2071_p7 }
  0x1a   : > { %p2067_p6 = pneg %p2066_p3 }
  0x1c   : > { %p2074_p5 = pnand %p2073_p9, %p2067_p6 }
  0x1e   : > { %2077 = shalt.err (!%p2074_p5)
}
  0x1f   : > { %s2179_s20 = smov 64   ;;  %s2180_s21 = smov 4  }
  0x20   : > { %1822 = dma.hbm_to_vmem [thread:$0]  (!%p2284_p12), %s2560_s5, 4096, %s230_s14, [#allocation6], %s2179_s20, %s2179_s20, %s2180_s21  }
  0x21   : > { %s1617_s24 = sshll.u32 %s2290_s16, 8  ;;  %s2574_s1 = sld [smem:[#allocation13_spill]] }
  0x22   : > { %s250_s13 = scalar_lea.vmem [#allocation3], %s1617_s24  ;;  %s247_s9 = scalar_lea.sflag [#allocation4], %s2290_s16 }
  0x23   : > { %s257_s19 = sshll.u32 %s250_s13, 4  ;;  %p2080_p5 = pneg %p2295_p0  ;;  %s2312_s19 = int_to_ptr.vmem [resolvable:$true] %s257_s19 }
  0x27   : > { %s2310_s10 = scalar_lea.hbm %s2574_s1, %s1764_s17  ;;  %s2083_s17 = scalar_lea.hbm %s2574_s1, 8192 }
  0x28   : > { %s2078_s26 = scalar_lea.hbm %s2310_s10, 4096  ;;  %p2084_p13 = scmp.lt.s32.totalorder %s2310_s10, %s2574_s1 }
  0x29   : > { %p2079_p4 = scmp.ne.s32.totalorder %s2310_s10, %s2078_s26  ;;  %p2085_p1 = scmp.lt.s32.totalorder %s2083_s17, %s2078_s26 }
  0x2b   : > { %p2081_p9 = pnand %p2080_p5, %p2079_p4  ;;  %p2086_p2 = por %p2085_p1, %p2084_p13 }
  0x2d   : > { %p2082_p12 = pneg %p2081_p9 }
  0x2f   : > { %p2087_p3 = pnand %p2086_p2, %p2082_p12 }
  0x31   : > { %2090 = shalt.err (!%p2087_p3)
}
  0x32   : > { %s2091_s22 = scalar_lea.vmem %s2312_s19, 4096  ;;  %s2181_s23 = smov [#allocation3]  }
  0x33   : > { %p2092_p6 = scmp.ne.s32.totalorder %s2312_s19, %s2091_s22  ;;  %s2096_s24 = sshll.u32 %s2181_s23, 4  ;;  %s2097_s24 = int_to_ptr.vmem [resolvable:$false] %s2096_s24 }
  0x34   : > { %s2098_s30 = scalar_lea.vmem %s2097_s24, 8192  ;;  %p2099_p4 = scmp.lt.s32.totalorder %s2312_s19, %s2097_s24 }
  0x35   : > { %p2094_p7 = pnand %p2092_p6, %p2080_p5  ;;  %p2100_p9 = scmp.lt.s32.totalorder %s2098_s30, %s2091_s22 }
  0x37   : > { %p2095_p11 = pneg %p2094_p7  ;;  %p2101_p8 = por %p2100_p9, %p2099_p4 }
  0x39   : > { %p2102_p13 = pnand %p2101_p8, %p2095_p11 }
  0x3b   : > { %2105 = shalt.err (!%p2102_p13)
}
  0x3c   : > { %s2182_s26 = smov 256   ;;  %s2183_s8 = smov 128  }
  0x3d   : > { %s2184_s13 = smov 8   ;;  %s275_s14 = sand.u32 1, %s2176_s27  }
  0x3e   : > { %1826 = dma.hbm_to_vmem [thread:$0]  (!%p2295_p0), %s2310_s10, 4096, %s2312_s19, %s247_s9, %s2182_s26, %s2183_s8, %s2184_s13  }
  0x3f   : > { %s1620_s15 = sshll.u32 %s2290_s16, 9  ;;  %s1766_s17 = sshll.u32 %s2176_s27, 13 }
  0x40   : > { %s279_s20 = scalar_lea.vmem [#allocation5], %s1620_s15  ;;  %s2348_s24 = scalar_lea.hbm %s2558_s3, %s1766_s17 }
  0x41   : > { %s287_s21 = sshll.u32 %s279_s20, 4  ;;  %s2352_s30 = scalar_lea.sflag [#allocation6], %s275_s14  ;;  %s2350_s21 = int_to_ptr.vmem [resolvable:$true] %s287_s21 }
  0x42   : > { %s2106_s1 = scalar_lea.hbm %s2348_s24, 8192  ;;  %s2111_s16 = scalar_lea.hbm %s2558_s3, 16384 }
  0x43   : > { %p2107_p8 = scmp.ne.s32.totalorder %s2348_s24, %s2106_s1  ;;  %p2112_p2 = scmp.lt.s32.totalorder %s2348_s24, %s2558_s3 }
  0x44   : > { %p2113_p3 = scmp.lt.s32.totalorder %s2111_s16, %s2106_s1 }
  0x45   : > { %p2109_p12 = pnand %p2107_p8, %p2080_p5 }
  0x46   : > { %p2114_p6 = por %p2113_p3, %p2112_p2 }
  0x47   : > { %p2110_p1 = pneg %p2109_p12 }
  0x49   : > { %p2115_p7 = pnand %p2114_p6, %p2110_p1 }
  0x4b   : > { %2118 = shalt.err (!%p2115_p7)
}
  0x4c   : > { %s2119_s8 = scalar_lea.vmem %s2350_s21, 8192  ;;  %s2185_s13 = smov [#allocation5]  }
  0x4d   : > { %p2120_p11 = scmp.ne.s32.totalorder %s2350_s21, %s2119_s8  ;;  %s2124_s14 = sshll.u32 %s2185_s13, 4  ;;  %s2125_s14 = int_to_ptr.vmem [resolvable:$false] %s2124_s14 }
  0x4e   : > { %s2126_s15 = scalar_lea.vmem %s2125_s14, 16384  ;;  %p2127_p13 = scmp.lt.s32.totalorder %s2350_s21, %s2125_s14 }
  0x4f   : > { %p2122_p4 = pnand %p2120_p11, %p2080_p5  ;;  %p2128_p8 = scmp.lt.s32.totalorder %s2126_s15, %s2119_s8 }
  0x51   : > { %p2123_p9 = pneg %p2122_p4  ;;  %p2129_p12 = por %p2128_p8, %p2127_p13 }
  0x53   : > { %p2130_p2 = pnand %p2129_p12, %p2123_p9 }
  0x55   : > { %2133 = shalt.err (!%p2130_p2)
}
  0x56   : > { %s2186_s1 = smov 16   ;;  %299 = sbr.rel (%p2276_p10) target bundleno = 823 (0x337), region = 48 }
  0x57   : > { %1829 = dma.hbm_to_vmem [thread:$0]  (!%p2295_p0), %s2348_s24, 8192, %s2350_s21, %s2352_s30, %s2182_s26, %s2182_s26, %s2186_s1  }
  0x58   : > { %s301_s17 = sand.u32 (!%p2276_p10), 1, %s2168_s25   ;;  %p2575_p5 = scmp.ne.s32.totalorder (!%p2276_p10), %s2570_s11, 0 }
  0x59   : > { %s1625_s20 = sshll.u32 (!%p2276_p10), %s301_s17, 8  ;;  %s302_s22 = scalar_lea.sflag (!%p2276_p10), [#allocation4], %s301_s17 }
  0x5a   : > { %s2382_s23 = scalar_lea.vmem (!%p2276_p10), [#allocation3], %s1625_s20 }
  0x5b   : > { %2151 = dma.done.wait (%p2575_p5), %s302_s22, 4096  }
  0x5c   : > { %2153 = vsyncadd (%p2575_p5), %s302_s22, 4294963200  ;;  %s310_s18 = sand.u32 1, %s2247_s28   ;;  %s1626_s27 = sshll.u32 %s301_s17, 9 }
  0x5d   : > { %s311_s26 = scalar_lea.sflag [#allocation6], %s310_s18  ;;  %s2389_s21 = scalar_lea.vmem [#allocation5], %s1626_s27 }
  0x5e   : > { %2155 = dma.done.wait (%p2575_p5), %s311_s26, 8192  }
  0x5f   : > { %2157 = vsyncadd (%p2575_p5), %s311_s26, 4294959104  ;;  %p2576_p10 = scmp.eq.s32.totalorder %s2247_s28, 0 }
  0x61   : > { %2159 = dma.done.wait (%p2576_p10), [#allocation6], 4096   ;;  %p2577_p0 = pmov %p2576_p10 }
  0x62   : > { %s1628_s12 = sshll.u32 %s2247_s28, 1  ;;  %p2578_p3 = scmp.ne.s32.totalorder %s2247_s28, 0 }
  0x63   : > { %2161 = vsyncadd (%p2577_p0), [#allocation6], 4294963200  ;;  %p355_p1 = scmp.lt.s32.totalorder %s1628_s12, 3 }
  0x64   : > { %364 = sbr.rel (%p2578_p3) target bundleno = 110 (0x6e), region = 64 }
  0x65   : > { %s2585_s12 = smov (!%p355_p1, %s1628_s12), 3 }
  0x66   : > { %s357_s9 = scalar_lea.vmem %s2557_s2, %s2585_s12 }
  0x69   : > { %v2187_v0 = vmov 0.0  }
  0x6a   : > { %365 = vst [vmem:[#allocation2 + $0x30] sm:$0xff] %v2187_v0  ;;  %366 = vst [vmem:[#allocation2] sm:$0xff] %v2187_v0 }
  0x6b   : > { %367 = vst [vmem:[#allocation2 + $0x18] sm:$0xff] %v2187_v0  ;;  %368 = vst [vmem:[#allocation2 + $0x10] sm:$0xff] %v2187_v0 }
  0x6c   : > { %369 = vst [vmem:[#allocation2 + $0x8] sm:$0xff] %v2187_v0  ;;  %370 = vst [vmem:[#allocation2 + $0x20] sm:$0xff] %v2187_v0 }
  0x6d   : > { %371 = vst [vmem:[#allocation2 + $0x28] sm:$0xff] %v2187_v0  ;;  %372 = vst [vmem:[#allocation2 + $0x38] sm:$0xff] %v2187_v0 }
  0x6e PF: > { %v1873_v1 = vld [vmem:[%s2382_s23 + $0x74] ss:$8 sps:$4 sm:$0xff]   ;;  %v1875_v2 = vld [vmem:[%s2382_s23 + $0x70] ss:$8 sps:$4 sm:$0xff]   ;;  %v1876_v3 = vld [vmem:[%s2382_s23 + $0x64] ss:$8 sps:$4 sm:$0xff]  }
  0x6f   : > { %589 = vmatprep.subr.bf16.mxu0 %v1873_v1  ;;  %v1878_v4 = vld [vmem:[%s2382_s23 + $0x60] ss:$8 sps:$4 sm:$0xff]   ;;  %v1879_v5 = vld [vmem:[%s2382_s23 + $0x54] ss:$8 sps:$4 sm:$0xff]   ;;  %v1881_v6 = vld [vmem:[%s2382_s23 + $0x50] ss:$8 sps:$4 sm:$0xff]  }
  0x70   : > { %590 = vmatpush1.bf16.msra.mxu0 %v1875_v2  ;;  %v1882_v7 = vld [vmem:[%s2382_s23 + $0x44] ss:$8 sps:$4 sm:$0xff]   ;;  %v1884_v8 = vld [vmem:[%s2382_s23 + $0x40] ss:$8 sps:$4 sm:$0xff]   ;;  %v1885_v9 = vld [vmem:[%s2382_s23 + $0x34] ss:$8 sps:$4 sm:$0xff]  }
  0x71   : > { %591 = vmatprep.subr.bf16.mxu0 %v1876_v3  ;;  %v1887_v10 = vld [vmem:[%s2382_s23 + $0x30] ss:$8 sps:$4 sm:$0xff]   ;;  %v1888_v11 = vld [vmem:[%s2382_s23 + $0x24] ss:$8 sps:$4 sm:$0xff]   ;;  %v1890_v12 = vld [vmem:[%s2382_s23 + $0x20] ss:$8 sps:$4 sm:$0xff]  }
  0x72   : > { %v1891_v13 = vld [vmem:[%s2382_s23 + $0x14] ss:$8 sps:$4 sm:$0xff]   ;;  %v1893_v14 = vld [vmem:[%s2382_s23 + $0x10] ss:$8 sps:$4 sm:$0xff]   ;;  %v1923_v15 = vld [vmem:[%s2555_s0 + $0x4] ss:$8 sps:$4 sm:$0xff]  }
  0x73   : > { %v1924_v16 = vld [vmem:[%s2389_s21 + $0xe4] ss:$16 sps:$4 sm:$0xff]   ;;  %621 = vmatprep.mubr.bf16.mxu0 %v1923_v15  ;;  %v1929_v18 = vld [vmem:[%s2389_s21 + $0xe0] ss:$16 sps:$4 sm:$0xff]   ;;  %v1928_v54 = vld [vmem:[%s2389_s21 + $0xec] ss:$16 sps:$4 sm:$0xff]  }
  0x74   : > { %592 = vmatpush1.bf16.msra.mxu0 %v1878_v4  ;;  %v1894_v17 = vld [vmem:[%s2382_s23 + $0x4] ss:$8 sps:$4 sm:$0xff]   ;;  %1030 = vmatprep.subr.bf16.mxu1 %v1924_v16  ;;  %v1896_v20 = vld [vmem:[%s2382_s23] ss:$8 sps:$4 sm:$0xff]   ;;  %v1897_v21 = vld [vmem:[%s2382_s23 + $0xf4] ss:$8 sps:$4 sm:$0xff]  }
  0x75   : > { %593 = vmatprep.subr.bf16.mxu0 %v1879_v5  ;;  %v1930_v19 = vld [vmem:[%s2389_s21 + $0xc4] ss:$16 sps:$4 sm:$0xff]   ;;  %1031 = vmatpush1.bf16.msra.mxu1 %v1929_v18  ;;  %v1935_v22 = vld [vmem:[%s2389_s21 + $0xc0] ss:$16 sps:$4 sm:$0xff]   ;;  %v1926_v57 = vld [vmem:[%s2389_s21 + $0xe8] ss:$16 sps:$4 sm:$0xff]  }
  0x76   : > { %1032 = vmatprep.subr.bf16.mxu1 %v1930_v19  ;;  %v1936_v23 = vld [vmem:[%s2389_s21 + $0xa4] ss:$16 sps:$4 sm:$0xff]   ;;  %v1899_v24 = vld [vmem:[%s2382_s23 + $0xf0] ss:$8 sps:$4 sm:$0xff]   ;;  %v1902_v28 = vld [vmem:[%s2382_s23 + $0xe0] ss:$8 sps:$4 sm:$0xff]  }
  0x77   : > { %v1941_v25 = vld [vmem:[%s2389_s21 + $0xa0] ss:$16 sps:$4 sm:$0xff]   ;;  %v1900_v26 = vld [vmem:[%s2382_s23 + $0xe4] ss:$8 sps:$4 sm:$0xff]   ;;  %v1903_v29 = vld [vmem:[%s2382_s23 + $0xd4] ss:$8 sps:$4 sm:$0xff]  }
  0x78   : > { %594 = vmatpush1.bf16.msra.mxu0 %v1881_v6  ;;  %v1942_v27 = vld [vmem:[%s2389_s21 + $0x84] ss:$16 sps:$4 sm:$0xff]   ;;  %v1947_v30 = vld [vmem:[%s2389_s21 + $0x80] ss:$16 sps:$4 sm:$0xff]   ;;  %v1934_v59 = vld [vmem:[%s2389_s21 + $0xcc] ss:$16 sps:$4 sm:$0xff]  }
  0x79   : > { %595 = vmatprep.subr.bf16.mxu0 %v1882_v7  ;;  %1033 = vmatpush1.bf16.msra.mxu1 %v1935_v22  ;;  %v1948_v31 = vld [vmem:[%s2389_s21 + $0x64] ss:$16 sps:$4 sm:$0xff]   ;;  %v1905_v32 = vld [vmem:[%s2382_s23 + $0xd0] ss:$8 sps:$4 sm:$0xff]   ;;  %v1908_v36 = vld [vmem:[%s2382_s23 + $0xc0] ss:$8 sps:$4 sm:$0xff]  }
  0x7a   : > { %1034 = vmatprep.subr.bf16.mxu1 %v1936_v23  ;;  %v1953_v33 = vld [vmem:[%s2389_s21 + $0x60] ss:$16 sps:$4 sm:$0xff]   ;;  %v1906_v34 = vld [vmem:[%s2382_s23 + $0xc4] ss:$8 sps:$4 sm:$0xff]   ;;  %v1909_v37 = vld [vmem:[%s2382_s23 + $0xb4] ss:$8 sps:$4 sm:$0xff]  }
  0x7b   : > { %v1954_v35 = vld [vmem:[%s2389_s21 + $0x44] ss:$16 sps:$4 sm:$0xff]   ;;  %v1959_v38 = vld [vmem:[%s2389_s21 + $0x40] ss:$16 sps:$4 sm:$0xff]   ;;  %v1932_v61 = vld [vmem:[%s2389_s21 + $0xc8] ss:$16 sps:$4 sm:$0xff]  }
  0x7c   : > { %596 = vmatpush1.bf16.msra.mxu0 %v1884_v8  ;;  %v1960_v39 = vld [vmem:[%s2389_s21 + $0x24] ss:$16 sps:$4 sm:$0xff]   ;;  %v1911_v40 = vld [vmem:[%s2382_s23 + $0xb0] ss:$8 sps:$4 sm:$0xff]   ;;  %v1914_v44 = vld [vmem:[%s2382_s23 + $0xa0] ss:$8 sps:$4 sm:$0xff]  }
  0x7d   : > { %597 = vmatprep.subr.bf16.mxu0 %v1885_v9  ;;  %1035 = vmatpush1.bf16.msra.mxu1 %v1941_v25  ;;  %v1965_v41 = vld [vmem:[%s2389_s21 + $0x20] ss:$16 sps:$4 sm:$0xff]   ;;  %v1912_v42 = vld [vmem:[%s2382_s23 + $0xa4] ss:$8 sps:$4 sm:$0xff]   ;;  %v1915_v45 = vld [vmem:[%s2382_s23 + $0x94] ss:$8 sps:$4 sm:$0xff]  }
  0x7e   : > { %1036 = vmatprep.subr.bf16.mxu1 %v1942_v27  ;;  %v1966_v43 = vld [vmem:[%s2389_s21 + $0x4] ss:$16 sps:$4 sm:$0xff]   ;;  %v1971_v46 = vld [vmem:[%s2389_s21] ss:$16 sps:$4 sm:$0xff]   ;;  %v1940_v63 = vld [vmem:[%s2389_s21 + $0xac] ss:$16 sps:$4 sm:$0xff]  }
  0x7f   : > { %v1972_v47 = vld [vmem:[%s2389_s21 + $0x1e4] ss:$16 sps:$4 sm:$0xff]   ;;  %v1917_v48 = vld [vmem:[%s2382_s23 + $0x90] ss:$8 sps:$4 sm:$0xff]   ;;  %v1920_v52 = vld [vmem:[%s2382_s23 + $0x80] ss:$8 sps:$4 sm:$0xff]  }
  0x80   : > { %598 = vmatpush1.bf16.msra.mxu0 %v1887_v10  ;;  %v1977_v49 = vld [vmem:[%s2389_s21 + $0x1e0] ss:$16 sps:$4 sm:$0xff]   ;;  %v1918_v50 = vld [vmem:[%s2382_s23 + $0x84] ss:$8 sps:$4 sm:$0xff]   ;;  %v1938_v1 = vld [vmem:[%s2389_s21 + $0xa8] ss:$16 sps:$4 sm:$0xff]  }
  0x81   : > { %599 = vmatprep.subr.bf16.mxu0 %v1888_v11  ;;  %1037 = vmatpush1.bf16.msra.mxu1 %v1947_v30  ;;  %v1978_v51 = vld [vmem:[%s2389_s21 + $0x1c4] ss:$16 sps:$4 sm:$0xff]   ;;  %v1983_v53 = vld [vmem:[%s2389_s21 + $0x1c0] ss:$16 sps:$4 sm:$0xff]   ;;  %v1946_v3 = vld [vmem:[%s2389_s21 + $0x8c] ss:$16 sps:$4 sm:$0xff]  }
  0x82   : > { %1038 = vmatprep.subr.bf16.mxu1 %v1948_v31  ;;  %v1984_v55 = vld [vmem:[%s2389_s21 + $0x1a4] ss:$16 sps:$4 sm:$0xff]   ;;  %v1921_v56 = vld [vmem:[%s2555_s0] ss:$8 sps:$4 sm:$0xff]   ;;  %v1952_v5 = vld [vmem:[%s2389_s21 + $0x6c] ss:$16 sps:$4 sm:$0xff]  }
  0x83   : > { %v1989_v58 = vld [vmem:[%s2389_s21 + $0x1a0] ss:$16 sps:$4 sm:$0xff]   ;;  %v1990_v60 = vld [vmem:[%s2389_s21 + $0x184] ss:$16 sps:$4 sm:$0xff]   ;;  %v1944_v4 = vld [vmem:[%s2389_s21 + $0x88] ss:$16 sps:$4 sm:$0xff]  }
  0x84   : > { %600 = vmatpush1.bf16.msra.mxu0 %v1890_v12  ;;  %v1995_v62 = vld [vmem:[%s2389_s21 + $0x180] ss:$16 sps:$4 sm:$0xff]   ;;  %v1996_v0 = vld [vmem:[%s2389_s21 + $0x164] ss:$16 sps:$4 sm:$0xff]   ;;  %v1950_v6 = vld [vmem:[%s2389_s21 + $0x68] ss:$16 sps:$4 sm:$0xff]  }
  0x85   : > { %601 = vmatprep.subr.bf16.mxu0 %v1891_v13  ;;  %1039 = vmatpush1.bf16.msra.mxu1 %v1953_v33  ;;  %v2001_v2 = vld [vmem:[%s2389_s21 + $0x160] ss:$16 sps:$4 sm:$0xff]   ;;  %v1958_v7 = vld [vmem:[%s2389_s21 + $0x4c] ss:$16 sps:$4 sm:$0xff]   ;;  %v1956_v8 = vld [vmem:[%s2389_s21 + $0x48] ss:$16 sps:$4 sm:$0xff]  }
  0x86   : > { %1040 = vmatprep.subr.bf16.mxu1 %v1954_v35  ;;  %v1964_v9 = vld [vmem:[%s2389_s21 + $0x2c] ss:$16 sps:$4 sm:$0xff]   ;;  %v1962_v10 = vld [vmem:[%s2389_s21 + $0x28] ss:$16 sps:$4 sm:$0xff]   ;;  %v2002_v23 = vld [vmem:[%s2389_s21 + $0x144] ss:$16 sps:$4 sm:$0xff]   ;;  %v409_v35 = vlaneseq }
  0x87   : > { %v1970_v11 = vld [vmem:[%s2389_s21 + $0xc] ss:$16 sps:$4 sm:$0xff]   ;;  %v1968_v12 = vld [vmem:[%s2389_s21 + $0x8] ss:$16 sps:$4 sm:$0xff]   ;;  %v2008_v27 = vld [vmem:[%s2389_s21 + $0x124] ss:$16 sps:$4 sm:$0xff]  }
  0x88   : > { %602 = vmatpush1.bf16.msra.mxu0 %v1893_v14  ;;  %v1976_v13 = vld [vmem:[%s2389_s21 + $0x1ec] ss:$16 sps:$4 sm:$0xff]   ;;  %v1974_v14 = vld [vmem:[%s2389_s21 + $0x1e8] ss:$16 sps:$4 sm:$0xff]   ;;  %v2013_v30 = vld [vmem:[%s2389_s21 + $0x120] ss:$16 sps:$4 sm:$0xff]  }
  0x89   : > { %603 = vmatprep.subr.bf16.mxu0 %v1894_v17  ;;  %1041 = vmatpush1.bf16.msra.mxu1 %v1959_v38  ;;  %v1982_v15 = vld [vmem:[%s2389_s21 + $0x1cc] ss:$16 sps:$4 sm:$0xff]   ;;  %v1980_v16 = vld [vmem:[%s2389_s21 + $0x1c8] ss:$16 sps:$4 sm:$0xff]   ;;  %v2014_v31 = vld [vmem:[%s2389_s21 + $0x104] ss:$16 sps:$4 sm:$0xff]  }
  0x8a   : > { %1042 = vmatprep.subr.bf16.mxu1 %v1960_v39  ;;  %v1988_v17 = vld [vmem:[%s2389_s21 + $0x1ac] ss:$16 sps:$4 sm:$0xff]   ;;  %v1986_v18 = vld [vmem:[%s2389_s21 + $0x1a8] ss:$16 sps:$4 sm:$0xff]   ;;  %v407_v39 = vld [vmem:[%s357_s9] sm:$0x3] }
  0x8b   : > { %v1994_v19 = vld [vmem:[%s2389_s21 + $0x18c] ss:$16 sps:$4 sm:$0xff]   ;;  %v1998_v22 = vld [vmem:[%s2389_s21 + $0x168] ss:$16 sps:$4 sm:$0xff]   ;;  %p1728_p6 = scmp.ne.s32.totalorder %s2247_s28, 1 }
  0x8c   : > { %604 = vmatpush1.bf16.msra.mxu0 %v1896_v20  ;;  %v1992_v20 = vld [vmem:[%s2389_s21 + $0x188] ss:$16 sps:$4 sm:$0xff]  }
  0x8d   : > { %605 = vmatprep.subr.bf16.mxu0 %v1897_v21  ;;  %1043 = vmatpush1.bf16.msra.mxu1 %v1965_v41  ;;  %v2000_v21 = vld [vmem:[%s2389_s21 + $0x16c] ss:$16 sps:$4 sm:$0xff]   ;;  %v2004_v25 = vld [vmem:[%s2389_s21 + $0x148] ss:$16 sps:$4 sm:$0xff]  }
  0x8e   : > { %1044 = vmatprep.subr.bf16.mxu1 %v1966_v43  ;;  %v2016_v33 = vld [vmem:[%s2389_s21 + $0x108] ss:$16 sps:$4 sm:$0xff]  }
  0x90   : > { %606 = vmatpush2.bf16.msra.mxu0 %v1899_v24  ;;  %v2006_v24 = vld [vmem:[%s2389_s21 + $0x14c] ss:$16 sps:$4 sm:$0xff]  }
  0x91   : > { %607 = vmatprep.subr.bf16.mxu0 %v1900_v26  ;;  %1045 = vmatpush1.bf16.msra.mxu1 %v1971_v46  ;;  %v2007_v26 = vld [vmem:[%s2389_s21 + $0x140] ss:$16 sps:$4 sm:$0xff]  }
  0x92   : > { %1046 = vmatprep.subr.bf16.mxu1 %v1972_v47 }
  0x94   : > { %608 = vmatpush2.bf16.msra.mxu0 %v1902_v28  ;;  %v2012_v28 = vld [vmem:[%s2389_s21 + $0x12c] ss:$16 sps:$4 sm:$0xff]  }
  0x95   : > { %609 = vmatprep.subr.bf16.mxu0 %v1903_v29  ;;  %1047 = vmatpush2.bf16.msra.mxu1 %v1977_v49  ;;  %v2010_v29 = vld [vmem:[%s2389_s21 + $0x128] ss:$16 sps:$4 sm:$0xff]  }
  0x96   : > { %1048 = vmatprep.subr.bf16.mxu1 %v1978_v51 }
  0x98   : > { %610 = vmatpush2.bf16.msra.mxu0 %v1905_v32  ;;  %v2018_v32 = vld [vmem:[%s2389_s21 + $0x10c] ss:$16 sps:$4 sm:$0xff]  }
  0x99   : > { %611 = vmatprep.subr.bf16.mxu0 %v1906_v34  ;;  %1049 = vmatpush2.bf16.msra.mxu1 %v1983_v53  ;;  %v2019_v34 = vld [vmem:[%s2389_s21 + $0x100] ss:$16 sps:$4 sm:$0xff]  }
  0x9a   : > { %1050 = vmatprep.subr.bf16.mxu1 %v1984_v55 }
  0x9c   : > { %612 = vmatpush2.bf16.msra.mxu0 %v1908_v36  ;;  %v2510_v36 = vshrl.u32 %v409_v35, 7 }
  0x9d   : > { %613 = vmatprep.subr.bf16.mxu0 %v1909_v37  ;;  %1051 = vmatpush2.bf16.msra.mxu1 %v1989_v58 }
  0x9e   : > { %1052 = vmatprep.subr.bf16.mxu1 %v1990_v60  ;;  %v415_v37 = vsub.s32 1, %v2510_v36  ;;  %v411_v38 = vsub.s32 0, %v2510_v36  ;;  %v637_v60 = vld [vmem:[#allocation2] sm:$0xff] }
  0xa0   : > { %614 = vmatpush2.bf16.msra.mxu0 %v1911_v40  ;;  %v416_v41 = vrot.slane %v407_v39, %v415_v37 }
  0xa1   : > { %615 = vmatprep.subr.bf16.mxu0 %v1912_v42  ;;  %1053 = vmatpush2.bf16.msra.mxu1 %v1995_v62  ;;  %v412_v42 = vrot.slane %v407_v39, %v411_v38 }
  0xa2   : > { %1054 = vmatprep.subr.bf16.mxu1 %v1996_v0 }
  0xa4   : > { %616 = vmatpush2.bf16.msra.mxu0 %v1914_v44 }
  0xa5   : > { %617 = vmatprep.subr.bf16.mxu0 %v1915_v45  ;;  %1055 = vmatpush2.bf16.msra.mxu1 %v2001_v2  ;;  %v640_v2 = vld [vmem:[#allocation2 + $0x8] sm:$0xff] }
  0xa6   : > { %1056 = vmatprep.subr.bf16.mxu1 %v2002_v23 }
  0xa8   : > { %618 = vmatpush2.bf16.msra.mxu0 %v1917_v48 }
  0xa9   : > { %619 = vmatprep.subr.bf16.mxu0 %v1918_v50  ;;  %1057 = vmatpush2.bf16.msra.mxu1 %v2007_v26 }
  0xaa   : > { %1058 = vmatprep.subr.bf16.mxu1 %v2008_v27 }
  0xac   : > { %620 = vmatpush2.bf16.msra.mxu0 %v1920_v52 }
  0xad   : > { %1073 = vmatprep.subr.bf16.mxu0 %v1928_v54  ;;  %1059 = vmatpush2.bf16.msra.mxu1 %v2013_v30 }
  0xae   : > { %1060 = vmatprep.subr.bf16.mxu1 %v2014_v31 }
  0xaf   : > { %622 = vmatmul.mubr.bf16.vlgmr.msra.gmra.mxu0 %v1921_v56  ;;  %v636_v56 = vld [vmem:[#allocation2 + $0x30] sm:$0xff] }
  0xb0   : > { %1074 = vmatpush1.bf16.msra.mxu0 %v1926_v57  ;;  %v638_v57 = vld [vmem:[#allocation2 + $0x18] sm:$0xff] }
  0xb1   : > { %1075 = vmatprep.subr.bf16.mxu0 %v1934_v59  ;;  %1061 = vmatpush2.bf16.msra.mxu1 %v2019_v34 }
  0xb4   : > { %1076 = vmatpush1.bf16.msra.mxu0 %v1932_v61  ;;  %v639_v61 = vld [vmem:[#allocation2 + $0x10] sm:$0xff] }
  0xb5   : > { %1077 = vmatprep.subr.bf16.mxu0 %v1940_v63 }
  0xb8   : > { %1078 = vmatpush1.bf16.msra.mxu0 %v1938_v1 }
  0xb9   : > { %1079 = vmatprep.subr.bf16.mxu0 %v1946_v3  ;;  %v642_v3 = vld [vmem:[#allocation2 + $0x28] sm:$0xff] }
  0xbc   : > { %1080 = vmatpush1.bf16.msra.mxu0 %v1944_v4 }
  0xbd   : > { %1081 = vmatprep.subr.bf16.mxu0 %v1952_v5 }
  0xc0   : > { %1082 = vmatpush1.bf16.msra.mxu0 %v1950_v6 }
  0xc1   : > { %1083 = vmatprep.subr.bf16.mxu0 %v1958_v7 }
  0xc4   : > { %1084 = vmatpush1.bf16.msra.mxu0 %v1956_v8  ;;  %v641_v8 = vld [vmem:[#allocation2 + $0x20] sm:$0xff] }
  0xc5   : > { %1085 = vmatprep.subr.bf16.mxu0 %v1964_v9  ;;  %v643_v9 = vld [vmem:[#allocation2 + $0x38] sm:$0xff] }
  0xc8   : > { %1086 = vmatpush1.bf16.msra.mxu0 %v1962_v10 }
  0xc9   : > { %1087 = vmatprep.subr.bf16.mxu0 %v1970_v11 }
  0xcc   : > { %1088 = vmatpush1.bf16.msra.mxu0 %v1968_v12 }
  0xcd   : > { %1089 = vmatprep.subr.bf16.mxu0 %v1976_v13 }
  0xd0   : > { %1090 = vmatpush2.bf16.msra.mxu0 %v1974_v14 }
  0xd1   : > { %1091 = vmatprep.subr.bf16.mxu0 %v1982_v15 }
  0xd4   : > { %1092 = vmatpush2.bf16.msra.mxu0 %v1980_v16 }
  0xd5   : > { %1093 = vmatprep.subr.bf16.mxu0 %v1988_v17 }
  0xd8   : > { %1094 = vmatpush2.bf16.msra.mxu0 %v1986_v18 }
  0xd9   : > { %1095 = vmatprep.subr.bf16.mxu0 %v1994_v19 }
  0xdc   : > { %1096 = vmatpush2.bf16.msra.mxu0 %v1992_v20 }
  0xdd   : > { %1097 = vmatprep.subr.bf16.mxu0 %v2000_v21 }
  0xe0   : > { %1098 = vmatpush2.bf16.msra.mxu0 %v1998_v22 }
  0xe1   : > { %1099 = vmatprep.subr.bf16.mxu0 %v2006_v24 }
  0xe4   : > { %1100 = vmatpush2.bf16.msra.mxu0 %v2004_v25 }
  0xe5   : > { %1101 = vmatprep.subr.bf16.mxu0 %v2012_v28 }
  0xe8   : > { %1102 = vmatpush2.bf16.msra.mxu0 %v2010_v29 }
  0xe9   : > { %1103 = vmatprep.subr.bf16.mxu0 %v2018_v32 }
  0xec   : > { %1104 = vmatpush2.bf16.msra.mxu0 %v2016_v33 }
 0x16f   : > { %v623_v40 = vpop.f32.mrf.mxu0 }
 0x170   : > { %v624_v47 = vadd.f32 %v623_v40, %v412_v42 }
 0x171   : > { %v625_v43 = vpop.f32.mrf.mxu0 }
 0x172   : > { %v626_v45 = vadd.f32 %v625_v43, %v416_v41  ;;  %v632_v53 = vmax.f32 %v624_v47, 0.0 }
 0x173   : > { %v627_v44 = vpop.f32.mrf.mxu0 }
 0x174   : > { %v628_v46 = vadd.f32 %v627_v44, %v412_v42  ;;  %v633_v51 = vmax.f32 %v626_v45, 0.0 }
 0x175   : > { %v629_v48 = vpop.f32.mrf.mxu0 }
 0x176   : > { %v630_v49 = vadd.f32 %v629_v48, %v416_v41  ;;  %v634_v50 = vmax.f32 %v628_v46, 0.0 }
 0x178   : > { %v635_v52 = vmax.f32 %v630_v49, 0.0  ;;  %v644_v55 = vpack.c.bf16 %v634_v50, %v632_v53 }
 0x17a   : > { %v645_v54 = vpack.c.bf16 %v635_v52, %v633_v51 }
 0x17c   : > { %1062 = vmatprep.mubr.bf16.mxu1 %v645_v54  ;;  %1105 = vmatprep.mubr.bf16.mxu0 %v645_v54 }
 0x17d   : > { %1063 = vmatmul.mubr.bf16.vlgmr.msra.gmra.mxu1 %v644_v55  ;;  %1106 = vmatmul.mubr.bf16.vlgmr.msra.gmra.mxu0 %v644_v55 }
 0x23d   : > { %v1064_v58 = vpop.f32.mrf.mxu1  ;;  %v1107_v59 = vpop.f32.mrf.mxu0 }
 0x23e   : > { %v1116_v62 = vadd.f32 %v1064_v58, %v636_v56  ;;  %v1118_v63 = vadd.f32 %v1107_v59, %v638_v57 }
 0x23f   : > { %v1066_v0 = vpop.f32.mrf.mxu1  ;;  %v1109_v1 = vpop.f32.mrf.mxu0 }
 0x240   : > { %1124 = vst [vmem:[#allocation2 + $0x30] sm:$0xff] %v1116_v62  ;;  %1126 = vst [vmem:[#allocation2 + $0x18] sm:$0xff] %v1118_v63  ;;  %v1117_v4 = vadd.f32 %v1066_v0, %v637_v60  ;;  %v1119_v5 = vadd.f32 %v1109_v1, %v639_v61 }
 0x241   : > { %v1068_v6 = vpop.f32.mrf.mxu1  ;;  %v1111_v7 = vpop.f32.mrf.mxu0 }
 0x242   : > { %1125 = vst [vmem:[#allocation2] sm:$0xff] %v1117_v4  ;;  %1127 = vst [vmem:[#allocation2 + $0x10] sm:$0xff] %v1119_v5  ;;  %v1120_v10 = vadd.f32 %v1068_v6, %v640_v2  ;;  %v1122_v11 = vadd.f32 %v1111_v7, %v642_v3  ;;  %1135 = sbr.rel (%p1728_p6) target bundleno = 823 (0x337), region = 68 }
 0x243   : > { %v1070_v12 = vpop.f32.mrf.mxu1  ;;  %v1113_v13 = vpop.f32.mrf.mxu0 }
 0x244   : > { %1128 = vst [vmem:[#allocation2 + $0x8] sm:$0xff] %v1120_v10  ;;  %1130 = vst [vmem:[#allocation2 + $0x28] sm:$0xff] %v1122_v11  ;;  %v1121_v14 = vadd.f32 %v1070_v12, %v641_v8  ;;  %v1123_v15 = vadd.f32 %v1113_v13, %v643_v9 }
 0x246   : > { %1129 = vst [vmem:[#allocation2 + $0x20] sm:$0xff] %v1121_v14  ;;  %1131 = vst [vmem:[#allocation2 + $0x38] sm:$0xff] %v1123_v15 }
 0x247   : > { %v2020_v16 = vld [vmem:[#allocation7 + $0x78] sm:$0xff]   ;;  %v2024_v20 = vld [vmem:[#allocation7 + $0x70] sm:$0xff]   ;;  %v2028_v24 = vld [vmem:[#allocation7 + $0x68] sm:$0xff]   ;;  %v1160_v48 = vsub.s32 3, %v2510_v36  ;;  %v1156_v50 = vsub.s32 2, %v2510_v36 }
 0x248   : > { %v2021_v17 = vld [vmem:[#allocation7 + $0xf8] sm:$0xff]   ;;  %1767 = vmatprep.subr.bf16.mxu0 %v2020_v16  ;;  %v2025_v21 = vld [vmem:[#allocation7 + $0xf0] sm:$0xff]   ;;  %v2029_v25 = vld [vmem:[#allocation7 + $0xe8] sm:$0xff]  }
 0x249   : > { %v2022_v18 = vld [vmem:[#allocation7 + $0x38] sm:$0xff]   ;;  %1789 = vmatprep.subr.bf16.mxu1 %v2021_v17  ;;  %v2026_v22 = vld [vmem:[#allocation7 + $0x30] sm:$0xff]   ;;  %v2030_v26 = vld [vmem:[#allocation7 + $0x28] sm:$0xff]  }
 0x24a   : > { %v2023_v19 = vld [vmem:[#allocation7 + $0xb8] sm:$0xff]   ;;  %1768 = vmatpush3.bf16.msra.mxu0 %v2022_v18  ;;  %v2027_v23 = vld [vmem:[#allocation7 + $0xb0] sm:$0xff]   ;;  %v2031_v27 = vld [vmem:[#allocation7 + $0xa8] sm:$0xff]  }
 0x24b   : > { %1790 = vmatpush3.bf16.msra.mxu1 %v2023_v19  ;;  %1769 = vmatprep.subr.bf16.mxu0 %v2024_v20  ;;  %v2032_v28 = vld [vmem:[#allocation7 + $0x60] sm:$0xff]   ;;  %v2036_v32 = vld [vmem:[#allocation7 + $0x58] sm:$0xff]   ;;  %v2040_v39 = vld [vmem:[#allocation7 + $0x50] sm:$0xff]  }
 0x24c   : > { %1791 = vmatprep.subr.bf16.mxu1 %v2025_v21  ;;  %v2033_v29 = vld [vmem:[#allocation7 + $0xe0] sm:$0xff]   ;;  %v2037_v33 = vld [vmem:[#allocation7 + $0xd8] sm:$0xff]   ;;  %v2041_v40 = vld [vmem:[#allocation7 + $0xd0] sm:$0xff]  }
 0x24d   : > { %v2034_v30 = vld [vmem:[#allocation7 + $0x20] sm:$0xff]   ;;  %v2038_v34 = vld [vmem:[#allocation7 + $0x18] sm:$0xff]   ;;  %v2042_v41 = vld [vmem:[#allocation7 + $0x10] sm:$0xff]  }
 0x24e   : > { %1770 = vmatpush3.bf16.msra.mxu0 %v2026_v22  ;;  %v2035_v31 = vld [vmem:[#allocation7 + $0xa0] sm:$0xff]   ;;  %v2039_v35 = vld [vmem:[#allocation7 + $0x98] sm:$0xff]   ;;  %v2043_v42 = vld [vmem:[#allocation7 + $0x90] sm:$0xff]  }
 0x24f   : > { %1792 = vmatpush3.bf16.msra.mxu1 %v2027_v23  ;;  %1771 = vmatprep.subr.bf16.mxu0 %v2028_v24  ;;  %v2044_v43 = vld [vmem:[#allocation7 + $0x48] sm:$0xff]   ;;  %v2048_v47 = vld [vmem:[#allocation7 + $0x40] sm:$0xff]   ;;  %v1139_v57 = vld [vmem:[#allocation2 + $0x10] sm:$0xff] }
 0x250   : > { %1793 = vmatprep.subr.bf16.mxu1 %v2029_v25  ;;  %v2045_v44 = vld [vmem:[#allocation7 + $0xc8] sm:$0xff]   ;;  %v2049_v49 = vld [vmem:[#allocation7 + $0xc0] sm:$0xff]   ;;  %v1143_v58 = vld [vmem:[#allocation2 + $0x38] sm:$0xff] }
 0x251   : > { %v2046_v45 = vld [vmem:[#allocation7 + $0x8] sm:$0xff]   ;;  %v2050_v51 = vld [vmem:[#allocation7] sm:$0xff]   ;;  %v1136_v60 = vld [vmem:[#allocation2 + $0x30] sm:$0xff] }
 0x252   : > { %1772 = vmatpush3.bf16.msra.mxu0 %v2030_v26  ;;  %v2047_v46 = vld [vmem:[#allocation7 + $0x88] sm:$0xff]   ;;  %v2051_v52 = vld [vmem:[#allocation7 + $0x80] sm:$0xff]   ;;  %v1138_v0 = vld [vmem:[#allocation2 + $0x18] sm:$0xff] }
 0x253   : > { %1794 = vmatpush3.bf16.msra.mxu1 %v2031_v27  ;;  %1773 = vmatprep.subr.bf16.mxu0 %v2032_v28  ;;  %v1137_v53 = vld [vmem:[#allocation2] sm:$0xff]  ;;  %v1140_v63 = vld [vmem:[#allocation2 + $0x8] sm:$0xff] }
 0x254   : > { %1795 = vmatprep.subr.bf16.mxu1 %v2033_v29  ;;  %v1141_v54 = vld [vmem:[#allocation2 + $0x20] sm:$0xff]  ;;  %v1142_v1 = vld [vmem:[#allocation2 + $0x28] sm:$0xff] }
 0x255   : > { %v1144_v55 = vld [vmem:[%s2559_s4] sm:$0xf] }
 0x256   : > { %1774 = vmatpush3.bf16.msra.mxu0 %v2034_v30  ;;  %v1153_v56 = vrot.slane %v1144_v55, %v415_v37  ;;  %v1161_v59 = vrot.slane %v1144_v55, %v1160_v48  ;;  %v1149_v61 = vrot.slane %v1144_v55, %v411_v38  ;;  %v1157_v62 = vrot.slane %v1144_v55, %v1156_v50  ;;  %v1729_v21 = vld [vmem:[%s2561_s6] ss:$0 sm:$0xff] }
 0x257   : > { %1796 = vmatpush3.bf16.msra.mxu1 %v2035_v31  ;;  %1775 = vmatprep.subr.bf16.mxu0 %v2036_v32 }
 0x258   : > { %1797 = vmatprep.subr.bf16.mxu1 %v2037_v33  ;;  %v1167_v2 = vadd.f32 %v1153_v56, %v1137_v53  ;;  %v1171_v3 = vadd.f32 %v1153_v56, %v1141_v54  ;;  %v1169_v4 = vadd.f32 %v1161_v59, %v1139_v57  ;;  %v1173_v5 = vadd.f32 %v1161_v59, %v1143_v58 }
 0x259   : > { %v1166_v6 = vadd.f32 %v1149_v61, %v1136_v60  ;;  %v1170_v7 = vadd.f32 %v1149_v61, %v1140_v63  ;;  %v1168_v8 = vadd.f32 %v1157_v62, %v1138_v0  ;;  %v1172_v9 = vadd.f32 %v1157_v62, %v1142_v1 }
 0x25a   : > { %1776 = vmatpush3.bf16.msra.mxu0 %v2038_v34  ;;  %v1175_v37 = vmax.f32 %v1167_v2, 0.0  ;;  %v1179_v10 = vmax.f32 %v1171_v3, 0.0  ;;  %v1177_v11 = vmax.f32 %v1169_v4, 0.0  ;;  %v1181_v12 = vmax.f32 %v1173_v5, 0.0 }
 0x25b   : > { %1798 = vmatpush3.bf16.msra.mxu1 %v2039_v35  ;;  %1777 = vmatprep.subr.bf16.mxu0 %v2040_v39  ;;  %v1174_v13 = vmax.f32 %v1166_v6, 0.0  ;;  %v1178_v14 = vmax.f32 %v1170_v7, 0.0  ;;  %v1176_v36 = vmax.f32 %v1168_v8, 0.0  ;;  %v1180_v38 = vmax.f32 %v1172_v9, 0.0 }
 0x25c   : > { %1799 = vmatprep.subr.bf16.mxu1 %v2041_v40  ;;  %v1183_v15 = vpack.c.bf16 %v1179_v10, %v1175_v37  ;;  %v1185_v16 = vpack.c.bf16 %v1181_v12, %v1177_v11 }
 0x25d   : > { %v1182_v17 = vpack.c.bf16 %v1178_v14, %v1174_v13  ;;  %v1184_v18 = vpack.c.bf16 %v1180_v38, %v1176_v36 }
 0x25e   : > { %1778 = vmatpush3.bf16.msra.mxu0 %v2042_v41  ;;  %1481 = vmatprep.mubr.bf16.mxu0 %v1183_v15 }
 0x25f   : > { %1800 = vmatpush3.bf16.msra.mxu1 %v2043_v42  ;;  %1779 = vmatprep.subr.bf16.mxu0 %v2044_v43 }
 0x260   : > { %1801 = vmatprep.subr.bf16.mxu1 %v2045_v44  ;;  %1522 = vmatprep.mubr.bf16.mxu1 %v1185_v16 }
 0x262   : > { %1780 = vmatpush3.bf16.msra.mxu0 %v2046_v45 }
 0x263   : > { %1802 = vmatpush3.bf16.msra.mxu1 %v2047_v46  ;;  %1781 = vmatprep.subr.bf16.mxu0 %v2048_v47 }
 0x264   : > { %1803 = vmatprep.subr.bf16.mxu1 %v2049_v49 }
 0x266   : > { %1782 = vmatpush3.bf16.msra.mxu0 %v2050_v51 }
 0x267   : > { %1804 = vmatpush3.bf16.msra.mxu1 %v2051_v52 }
 0x269   : > { %1482 = vmatmul.mubr.bf16.vlgmr.msra.gmra.mxu0 %v1182_v17 }
 0x26a   : > { %1523 = vmatmul.mubr.bf16.vlgmr.msra.gmra.mxu1 %v1184_v18 }
 0x329   : > { %v1783_v19 = vpop.f32.mrf.mxu0 }
 0x32a   : > { %v1805_v20 = vpop.f32.mrf.mxu1 }
 0x32b   : > { %v1784_v22 = vpop.f32.mrf.mxu0 }
 0x32c   : > { %v1806_v23 = vpop.f32.mrf.mxu1  ;;  %v1785_v24 = vadd.f32 %v1784_v22, %v1783_v19 }
 0x32d   : > { %v1786_v25 = vpop.f32.mrf.mxu0  ;;  %v1807_v28 = vadd.f32 %v1806_v23, %v1805_v20 }
 0x32e   : > { %v1808_v26 = vpop.f32.mrf.mxu1  ;;  %v1484_v27 = vadd.f32 %v1785_v24, %v1729_v21 }
 0x32f   : > { %v1787_v29 = vpop.f32.mrf.mxu0 }
 0x330   : > { %v1809_v30 = vpop.f32.mrf.mxu1  ;;  %v1525_v31 = vadd.f32 %v1807_v28, %v1484_v27  ;;  %v1788_v32 = vadd.f32 %v1787_v29, %v1786_v25 }
 0x331   : > { %v1810_v34 = vadd.f32 %v1809_v30, %v1808_v26 }
 0x332   : > { %1531 = vst [vmem:[%s2562_s7] sm:$0xff] %v1525_v31  ;;  %v1487_v33 = vadd.f32 %v1788_v32, %v1729_v21 }
 0x334   : > { %v1528_v35 = vadd.f32 %v1810_v34, %v1487_v33 }
 0x336   : > { %1532 = vst [vmem:[%s2562_s7 + $0x8] sm:$0xff] %v1528_v35 }
 0x337 PF: > { %s2579_s18 = sld [smem:[#allocation11_spill]]  ;;  %p20_p7 = scmp.ge.s32.totalorder %s2250_s29, 4  }
 0x338   : > { %s2580_s26 = sld [smem:[#allocation12_spill]]  ;;  %s2581_s24 = smov %s2168_s25 }
 0x339   : > { %s2583_s27 = smov %s2250_s29  ;;  %22 = sbr.rel (!%p20_p7) target bundleno = 7 (0x7), region = 112 }
 0x33d   : > { %s2582_s25 = smov %s2579_s18 }
 0x33e   :  { %1544 = vsyncpa [#allocation4], 1 }
 0x33f   :  { %1546 = vsyncpa [#allocation4 + $0x1], 1 }
 0x340   :  { %1547 = vsyncpa [#allocation6], 1 }
 0x341   :  { %1549 = vsyncpa [#allocation6 + $0x1], 1 }

</bundles_post_ra>
